<compile_context>
chip_gen: v7x
topology: tpu7x:2x2x1
jax: 0.10.0
libtpu: 0.0.40
codegen_flags: <defaults>
</compile_context>

<pallas_src>
import functools

import jax
import jax.numpy as jnp
from jax.experimental import pallas as pl
from jax.experimental.pallas import tpu as pltpu

_VMEM_LIMIT = 48 * 1024 * 1024


def _row_tile(n):
    """Row tile for the gridded kernels: whole extent when small, 128 otherwise."""
    if n <= 128:
        return n
    assert n % 128 == 0, "row count must be a multiple of 128 when > 128"
    return 128


# ---------------------------------------------------------------------------
# Row-tiled linear kernel (used for bottleneck / fused projections / merge /
# predictor).  Grid over row tiles, weights resident, "parallel" semantics.
# ---------------------------------------------------------------------------
def _linear_kernel(x_ref, w_ref, b_ref, o_ref, *, relu):
    y = jnp.dot(x_ref[...], w_ref[...], preferred_element_type=jnp.float32)
    y = y + b_ref[...]
    if relu:
        y = jnp.maximum(y, 0.0)
    o_ref[...] = y.astype(o_ref.dtype)


def pallas_linear(x, w, b, relu=False):
    m, k = x.shape
    k2, nout = w.shape
    assert k == k2
    tm = _row_tile(m)
    return pl.pallas_call(
        functools.partial(_linear_kernel, relu=relu),
        out_shape=jax.ShapeDtypeStruct((m, nout), jnp.float32),
        grid=(m // tm,),
        in_specs=[
            pl.BlockSpec((tm, k), lambda r: (r, 0)),
            pl.BlockSpec((k, nout), lambda r: (0, 0)),
            pl.BlockSpec((1, nout), lambda r: (0, 0)),
        ],
        out_specs=pl.BlockSpec((tm, nout), lambda r: (r, 0)),
        compiler_params=pltpu.CompilerParams(
            dimension_semantics=("parallel",),
            vmem_limit_bytes=_VMEM_LIMIT),
        cost_estimate=pl.CostEstimate(
            flops=2 * m * k * nout,
            transcendentals=0,
            bytes_accessed=4 * (m * k + k * nout + m * nout)),
    )(x, w, b.reshape(1, nout))


# ---------------------------------------------------------------------------
# Edge projection kernel in the persistent feature-major layout:
#   fe[g, i*N+j] = sum_f We[f, g] * e[f, i*N+j] + be[g]
# Lane dim is N^2 (lane-dense), column-tiled with "parallel" semantics.
# ---------------------------------------------------------------------------
def _edge_proj_kernel(wt_ref, b_ref, e_ref, o_ref):
    y = jnp.dot(wt_ref[...], e_ref[...], preferred_element_type=jnp.float32)
    o_ref[...] = (y + b_ref[...]).astype(o_ref.dtype)


def edge_project(e3, we_t, be_col, col_tile):
    f_in, n, _ = e3.shape
    f_out = we_t.shape[0]
    n2 = n * n
    e2 = e3.reshape(f_in, n2)                     # metadata-only reshape
    ct = col_tile
    fe2 = pl.pallas_call(
        _edge_proj_kernel,
        out_shape=jax.ShapeDtypeStruct((f_out, n2), jnp.float32),
        grid=(n2 // ct,),
        in_specs=[
            pl.BlockSpec((f_out, f_in), lambda c: (0, 0)),
            pl.BlockSpec((f_out, 1), lambda c: (0, 0)),
            pl.BlockSpec((f_in, ct), lambda c: (0, c)),
        ],
        out_specs=pl.BlockSpec((f_out, ct), lambda c: (0, c)),
        compiler_params=pltpu.CompilerParams(
            dimension_semantics=("parallel",),
            vmem_limit_bytes=_VMEM_LIMIT),
        cost_estimate=pl.CostEstimate(
            flops=2 * f_out * f_in * n2,
            transcendentals=0,
            bytes_accessed=4 * (f_in * n2 + f_out * n2 + f_out * f_in)),
    )(we_t, be_col, e2)
    return fe2.reshape(f_out, n, n)


# ---------------------------------------------------------------------------
# Fused EGAT attention kernel (per query-row tile):
#   builds f_ij for all heads in one pass, writes the lambda-mixed edge output
#   with a single full-tile store, masked softmax attention per head,
#   per-head aggregation matmul, lambda-mixed node output.
# ---------------------------------------------------------------------------
def _egat_attn_kernel(attn_ref, fsrc_ref, fdst_ref, hv_ref, hprev_ref, adj_ref,
                      fe_ref, eprev_ref, hout_ref, eout_ref,
                      *, num_heads, d_e, d_h, slope, lamda):
    adj = adj_ref[...]                                   # (T, N) 0/1 mask
    neg = jnp.float32(-1e30)
    lam = jnp.float32(lamda)
    one_m_lam = jnp.float32(1.0 - lamda)

    # f_{g,i,j} = fsrc_{g,i} + fdst_{g,j} + fe_{g,i,j}  for ALL heads at once.
    f = (fe_ref[...]
         + fsrc_ref[...][:, :, None]
         + fdst_ref[...][:, None, :])                    # (H*De, T, N)

    # Fused lambda residual for the edge output (raw f_ij, per DGL EGATConv);
    # single unmasked full-tile store.
    eout_ref[...] = lam * f + one_m_lam * eprev_ref[...]

    # LeakyReLU + attention-vector weighting, vectorized over all heads.
    act = jnp.where(f > 0, f, jnp.float32(slope) * f)
    w = act * attn_ref[...]                              # (H*De, T, N)

    heads = []
    for h in range(num_heads):                           # static unroll (small H)
        lo, hi = h * d_e, (h + 1) * d_e
        # Per-head score: reduce over this head's De block (leading-dim slice
        # only; trailing (T, N) layout untouched).
        score = jnp.sum(w[lo:hi], axis=0)                # (T, N)
        score = jnp.where(adj > 0, score, neg)

        m = jnp.max(score, axis=-1, keepdims=True)
        p = jnp.exp(score - m)                           # mask already applied
        denom = jnp.sum(p, axis=-1, keepdims=True)
        alpha = p * pl.reciprocal(denom, approx=True)    # EUP, off the VALU

        hv_h = hv_ref[:, h * d_h:(h + 1) * d_h]          # (N, Dh)
        heads.append(jnp.dot(alpha, hv_h, preferred_element_type=jnp.float32))

    h_new = jnp.concatenate(heads, axis=-1)              # (T, H*Dh)
    hout_ref[...] = lam * h_new + one_m_lam * hprev_ref[...]


def egat_layer(adj, h, e3, *, w_node, b_node, we_t, be_col, attn_b,
               num_heads, d_h, d_e, lamda):
    n = h.shape[0]
    f_attn = num_heads * d_e
    f_h = num_heads * d_h
    tile = _row_tile(n)

    # Fused node projections: [fsrc | fdst | hv] in one matmul.
    proj = pallas_linear(h, w_node, b_node)              # (N, 2*H*De + H*Dh)
    fsrc_t = proj[:, :f_attn].T                          # (H*De, N) lane-dense
    fdst_t = proj[:, f_attn:2 * f_attn].T                # (H*De, N) lane-dense
    hv = proj[:, 2 * f_attn:]                            # (N, H*Dh)

    # We projection in the persistent (H*De, N, N) layout (no big transposes).
    fe3 = edge_project(e3, we_t, be_col, col_tile=tile * n)

    kernel = functools.partial(_egat_attn_kernel, num_heads=num_heads,
                               d_e=d_e, d_h=d_h, slope=0.2, lamda=lamda)
    h_new, e_new3 = pl.pallas_call(
        kernel,
        out_shape=(jax.ShapeDtypeStruct((n, f_h), jnp.float32),
                   jax.ShapeDtypeStruct((f_attn, n, n), jnp.float32)),
        grid=(n // tile,),
        in_specs=[
            pl.BlockSpec((f_attn, 1, 1), lambda r: (0, 0, 0)),    # attn vectors
            pl.BlockSpec((f_attn, tile), lambda r: (0, r)),       # fsrc (row tile)
            pl.BlockSpec((f_attn, n), lambda r: (0, 0)),          # fdst (all cols)
            pl.BlockSpec((n, f_h), lambda r: (0, 0)),             # hv (all rows)
            pl.BlockSpec((tile, f_h), lambda r: (r, 0)),          # h_prev (residual)
            pl.BlockSpec((tile, n), lambda r: (r, 0)),            # adjacency rows
            pl.BlockSpec((f_attn, tile, n), lambda r: (0, r, 0)),  # fe tile
            pl.BlockSpec((f_attn, tile, n), lambda r: (0, r, 0)),  # e_prev tile
        ],
        out_specs=(pl.BlockSpec((tile, f_h), lambda r: (r, 0)),
                   pl.BlockSpec((f_attn, tile, n), lambda r: (0, r, 0))),
        compiler_params=pltpu.CompilerParams(
            dimension_semantics=("parallel",),
            vmem_limit_bytes=_VMEM_LIMIT),
        cost_estimate=pl.CostEstimate(
            flops=2 * num_heads * n * n * (3 * d_e + d_h),
            transcendentals=num_heads * n * n,
            bytes_accessed=4 * (3 * f_attn * n * n + 2 * n * f_h + n * n)),
    )(attn_b, fsrc_t, fdst_t, hv, h, adj, fe3, e3)

    return h_new, e_new3


# ---------------------------------------------------------------------------
# Full forward (glue in plain JAX, all heavy compute inside Pallas kernels)
# ---------------------------------------------------------------------------
def egat_forward(params, adj, h_in, e_in, *, f_h, f_e, num_heads, lamda, l_num):
    d_h = f_h // num_heads
    d_e = f_e // num_heads
    f_attn = num_heads * d_e
    n = h_in.shape[0]

    # One-time fused / transposed parameter prep (the single EGAT layer is
    # reused across all l iterations, as in the torch module).
    w_node = jnp.concatenate(
        [params["eg_wsrc"], params["eg_wdst"], params["eg_wv"]], axis=1)
    b_node = jnp.concatenate(
        [params["eg_bsrc"], params["eg_bdst"], params["eg_bv"]], axis=0)
    we_t = params["eg_we"].T                              # (H*De, f_e)
    be_col = params["eg_be"].reshape(f_attn, 1)
    attn_b = params["eg_attn"].reshape(f_attn, 1, 1)

    # BottleneckLayer
    e_flat = e_in.reshape(-1, e_in.shape[-1])
    h_out = pallas_linear(h_in, params["bn_wh"], params["bn_bh"], relu=True)
    e_bn = pallas_linear(e_flat, params["bn_we"], params["bn_be"], relu=True)
    # Single boundary relayout into the persistent feature-major edge layout;
    # after this, no per-layer edge transposes are needed.
    e_out3 = e_bn.T.reshape(f_e, n, n)

    h_final = h_out
    for i in range(l_num):
        h_out, e_out3 = egat_layer(
            adj, h_out, e_out3,
            w_node=w_node, b_node=b_node, we_t=we_t, be_col=be_col,
            attn_b=attn_b, num_heads=num_heads, d_h=d_h, d_e=d_e, lamda=lamda)
        if i != 0:
            h_final = jnp.concatenate([h_final, h_out], axis=-1)

    # MergeLayer (node branch).
    h_final = pallas_linear(h_final, params["mg_wh"], params["mg_bh"], relu=True)
    # TODO(synk): the merged edge features are computed in the torch module but
    # never consumed by the prediction head, so that dead matmul is skipped.

    # MLPPredictor
    z = pallas_linear(h_final, params["pr_w1"], params["pr_b1"], relu=True)
    return pallas_linear(z, params["pr_w2"], params["pr_b2"], relu=False)


# ---------------------------------------------------------------------------
# Deterministic parameter init (synthetic weights, no checkpoint)
# ---------------------------------------------------------------------------
def _dense_init(key, fan_in, fan_out):
    kw, kb = jax.random.split(key)
    w = jax.random.normal(kw, (fan_in, fan_out), jnp.float32) / jnp.sqrt(
        jnp.float32(fan_in))
    b = 0.01 * jax.random.normal(kb, (fan_out,), jnp.float32)
    return w, b


def init_params(key, *, node_feats, edge_feats, f_h, f_e, num_heads, pred_hid,
                l_num):
    d_h = f_h // num_heads
    d_e = f_e // num_heads
    keys = jax.random.split(key, 11)
    p = {}
    # BottleneckLayer
    p["bn_wh"], p["bn_bh"] = _dense_init(keys[0], node_feats, f_h)
    p["bn_we"], p["bn_be"] = _dense_init(keys[1], edge_feats, f_e)
    # EGATLayer (single shared layer, reused across l iterations as in torch)
    p["eg_wsrc"], p["eg_bsrc"] = _dense_init(keys[2], f_h, num_heads * d_e)
    p["eg_wdst"], p["eg_bdst"] = _dense_init(keys[3], f_h, num_heads * d_e)
    p["eg_we"], p["eg_be"] = _dense_init(keys[4], f_e, num_heads * d_e)
    p["eg_wv"], p["eg_bv"] = _dense_init(keys[5], f_h, num_heads * d_h)
    p["eg_attn"] = jax.random.normal(keys[6], (num_heads, d_e),
                                     jnp.float32) / jnp.sqrt(jnp.float32(d_e))
    # MergeLayer
    p["mg_wh"], p["mg_bh"] = _dense_init(keys[7], f_h * l_num, f_h)
    p["mg_we"], p["mg_be"] = _dense_init(keys[8], f_e * l_num, f_e)
    # MLPPredictor
    p["pr_w1"], p["pr_b1"] = _dense_init(keys[9], f_h, 64)
    p["pr_w2"], p["pr_b2"] = _dense_init(keys[10], 64, pred_hid)
    return p


# ---------------------------------------------------------------------------
if __name__ == "__main__":
    N = 8                 # number of graph nodes
    node_feats = 16
    edge_feats = 8
    f_h, f_e = 32, 16
    num_heads = 4
    lamda = 0.5
    pred_hid = 4
    l_num = 2

    key = jax.random.PRNGKey(0)
    k_h, k_e, k_a, k_p = jax.random.split(key, 4)

    h_in = jax.random.normal(k_h, (N, node_feats), jnp.float32)
    e_in = jax.random.normal(k_e, (N, N, edge_feats), jnp.float32)
    adj = (jax.random.uniform(k_a, (N, N)) > 0.5).astype(jnp.float32)
    adj = jnp.maximum(adj, jnp.eye(N, dtype=jnp.float32))  # self-loops (no empty rows)

    params = init_params(k_p, node_feats=node_feats, edge_feats=edge_feats,
                         f_h=f_h, f_e=f_e, num_heads=num_heads,
                         pred_hid=pred_hid, l_num=l_num)

    out = egat_forward(params, adj, h_in, e_in, f_h=f_h, f_e=f_e,
                       num_heads=num_heads, lamda=lamda, l_num=l_num)
    out = jax.block_until_ready(out)
    assert out.shape == (N, pred_hid), out.shape
    assert jnp.all(jnp.isfinite(out))
    print("KERNEL_OK")
</pallas_src>

<mosaic_0001>
module attributes {stable_mosaic.version = 11 : i64} {
  func.func @_linear_kernel(%arg0: i32, %arg1: memref<8x16xf32, #tpu.memory_space<vmem>>, %arg2: memref<16x32xf32, #tpu.memory_space<vmem>>, %arg3: memref<1x32xf32, #tpu.memory_space<vmem>>, %arg4: memref<8x32xf32, #tpu.memory_space<vmem>>) attributes {dimension_semantics = [#tpu.dimension_semantics<parallel>], iteration_bounds = array<i64: 1>, scalar_prefetch = 0 : i64, scratch_operands = 0 : i64, tpu.core_type = #tpu.core_type<tc>, window_params = [{transform_indices = @transform_0, window_bounds = array<i64: 8, 16>}, {pipeline_mode = #tpu.pipeline_mode<synchronous>, transform_indices = @transform_1, window_bounds = array<i64: 16, 32>}, {pipeline_mode = #tpu.pipeline_mode<synchronous>, transform_indices = @transform_2, window_bounds = array<i64: 1, 32>}, {transform_indices = @transform_3, window_bounds = array<i64: 8, 32>}]} {
    %c0 = arith.constant 0 : index
    %c0_0 = arith.constant 0 : index
    %0 = vector.load %arg1[%c0, %c0_0] : memref<8x16xf32, #tpu.memory_space<vmem>>, vector<8x16xf32>
    %c0_1 = arith.constant 0 : index
    %c0_2 = arith.constant 0 : index
    %1 = vector.load %arg2[%c0_1, %c0_2] : memref<16x32xf32, #tpu.memory_space<vmem>>, vector<16x32xf32>
    %cst = arith.constant dense<0.000000e+00> : vector<8x32xf32>
    %2 = tpu.matmul %0, %1, %cst {dimension_numbers = #tpu.dot_dimension_numbers<[1], [0], [0], [1], [0, 0, 1, 1], [], []>} : vector<8x16xf32>, vector<16x32xf32>, vector<8x32xf32> -> vector<8x32xf32>
    %c0_3 = arith.constant 0 : index
    %c0_4 = arith.constant 0 : index
    %3 = vector.load %arg3[%c0_3, %c0_4] : memref<1x32xf32, #tpu.memory_space<vmem>>, vector<1x32xf32>
    %4 = vector.broadcast %3 : vector<1x32xf32> to vector<8x32xf32>
    %5 = arith.addf %2, %4 : vector<8x32xf32>
    %cst_5 = arith.constant 0.000000e+00 : f32
    %6 = vector.broadcast %cst_5 : f32 to vector<8x32xf32>
    %7 = arith.maximumf %5, %6 : vector<8x32xf32>
    %c0_6 = arith.constant 0 : index
    %c0_7 = arith.constant 0 : index
    %8 = vector.load %arg4[%c0_6, %c0_7] : memref<8x32xf32, #tpu.memory_space<vmem>>, vector<8x32xf32>
    tpu.vector_store %arg4[%c0_6, %c0_7], %7 {strides = array<i32>} : memref<8x32xf32, #tpu.memory_space<vmem>>, vector<8x32xf32>,
    return
  }
  func.func @transform_0(%arg0: i32) -> (i32, i32) {
    %c0_i32 = arith.constant 0 : i32
    %c0_i32_0 = arith.constant 0 : i32
    return %arg0, %c0_i32 : i32, i32
  }
  func.func @transform_1(%arg0: i32) -> (i32, i32) {
    %c0_i32 = arith.constant 0 : i32
    %c0_i32_0 = arith.constant 0 : i32
    %c0_i32_1 = arith.constant 0 : i32
    return %c0_i32, %c0_i32_0 : i32, i32
  }
  func.func @transform_2(%arg0: i32) -> (i32, i32) {
    %c0_i32 = arith.constant 0 : i32
    %c0_i32_0 = arith.constant 0 : i32
    %c0_i32_1 = arith.constant 0 : i32
    return %c0_i32, %c0_i32_0 : i32, i32
  }
  func.func @transform_3(%arg0: i32) -> (i32, i32) {
    %c0_i32 = arith.constant 0 : i32
    %c0_i32_0 = arith.constant 0 : i32
    return %arg0, %c0_i32 : i32, i32
  }
}

</mosaic_0001>

<bundles_post_ra>
// kernel: tpu_custom_call.1
= control target key start
LH: loop header
LB: loop body
LE: loop exit
PB: predicated region body
PF: predicated region fallthrough
CT: control target
= control target key end

     0   :  { %8 = vsyncpa [#allocation3], 0  ;;  %s313_s0 = inlined_call_operand.hbm [shape: f32[8,16], index: 0, kind: input, shape index: {}]   ;;  %s314_s1 = inlined_call_operand.hbm [shape: f32[16,32], index: 1, kind: input, shape index: {}]   ;;  %s315_s2 = inlined_call_operand.vmem [shape: f32[1,32], index: 2, kind: input, shape index: {}]   ;;  %s316_s3 = inlined_call_operand.hbm [shape: f32[8,32], index: 3, kind: output, shape index: {}]  }
   0x1   :  { %9 = vsyncpa [#allocation6], 0 }
   0x2   :  { %10 = vsyncpa [#allocation4], 0  ;;  %s239_s12 = smov [#allocation2]   ;;  %s240_s14 = smov [#allocation5]  }
   0x3   :  { %s17_s13 = sshll.u32 %s239_s12, 4  ;;  %s26_s15 = sshll.u32 %s240_s14, 4  ;;  %s18_s13 = int_to_ptr.vmem [resolvable:$true] %s17_s13  ;;  %s267_s15 = int_to_ptr.vmem [resolvable:$true] %s26_s15 }
   0x4   :  { %s167_s18 = scalar_lea.hbm %s313_s0, 128 }
   0x5   :  { %p168_p0 = scmp.ne.s32.totalorder %s313_s0, %s167_s18  ;;  %p171_p1 = scmp.lt.u32.totalorder %s167_s18, %s313_s0 }
   0x7   :  { %p173_p2 = pnand %p171_p1, %p168_p0 }
   0x9   :  { %176 = shalt.err (!%p173_p2)
}
   0xa   :  { %s177_s23 = scalar_lea.vmem %s18_s13, 128  ;;  %p182_p4 = scmp.lt.s32.totalorder %s18_s13, %s18_s13 }
   0xb   :  { %p178_p3 = scmp.ne.s32.totalorder %s18_s13, %s177_s23  ;;  %p183_p5 = scmp.lt.s32.totalorder %s177_s23, %s177_s23 }
   0xd   :  { %p184_p6 = por %p183_p5, %p182_p4 }
   0xf   :  { %p185_p7 = pnand %p184_p6, %p178_p3 }
  0x11   :  { %188 = shalt.err (!%p185_p7)
}
  0x12   :  { %20 = dma.hbm_to_vmem [thread:$0]  %s313_s0, 128, %s18_s13, [#allocation3]  }
  0x13   :  { %s189_s28 = scalar_lea.hbm %s314_s1, 256 }
  0x14   :  { %p190_p8 = scmp.ne.s32.totalorder %s314_s1, %s189_s28  ;;  %p193_p9 = scmp.lt.u32.totalorder %s189_s28, %s314_s1 }
  0x16   :  { %p195_p10 = pnand %p193_p9, %p190_p8 }
  0x18   :  { %198 = shalt.err (!%p195_p10)
}
  0x19   :  { %s199_s6 = scalar_lea.vmem %s267_s15, 256  ;;  %p204_p12 = scmp.lt.s32.totalorder %s267_s15, %s267_s15 }
  0x1a   :  { %p200_p11 = scmp.ne.s32.totalorder %s267_s15, %s199_s6  ;;  %p205_p13 = scmp.lt.s32.totalorder %s199_s6, %s199_s6 }
  0x1c   :  { %p206_p0 = por %p205_p13, %p204_p12 }
  0x1e   :  { %p207_p1 = pnand %p206_p0, %p200_p11 }
  0x20   :  { %210 = shalt.err (!%p207_p1)
}
  0x21   :  { %s241_s0 = smov 128   ;;  %s242_s7 = smov 8  }
  0x22   :  { %32 = dma.hbm_to_vmem [thread:$0]  %s314_s1, 256, %s267_s15, [#allocation6], %s241_s0, %s241_s0, %s242_s7  }
  0x23   :  { %233 = dma.done.wait [#allocation3], 128  }
  0x24   :  { %234 = vsyncadd [#allocation3], 4294967168 }
  0x25   :  { %235 = dma.done.wait [#allocation6], 256  }
  0x26   :  { %236 = vsyncadd [#allocation6], 4294967040  ;;  %v243_v0 = vmov 0.0|0.0   ;;  %vm244_vm0 = vmmov 0   ;;  %v245_v1 = vmov 0.0   ;;  %v42_v2 = vld [vmem:[#allocation5] sm:$0xff] }
  0x27   :  { %156 = vmatprep.subr.bf16.mxu0 %v243_v0  ;;  %153 = vmatprep.mubr.msk.f32.mxu0 %vm244_vm0, %v245_v1  ;;  %v43_v3 = vld [vmem:[#allocation5 + $0x8] sm:$0xff]  ;;  %v41_v5 = vld [vmem:[#allocation2] sm:$0xff]  ;;  %vm51_vm1 = vcmask 130048   ;;  %s246_s1 = smov [#allocation7]   ;;  %vm126_vm2 = vcmask 261120  }
  0x28   :  { %v157_v4 = vpack.c.bf16 %v43_v3, %v42_v2  ;;  %v144_v6 = vld [vmem:[%s315_s2] ss:$0 sm:$0xff]  ;;  %s134_s12 = sshll.u32 %s246_s1, 4  ;;  %s135_s12 = int_to_ptr.vmem [resolvable:$true] %s134_s12 }
  0x29   :  { %s211_s13 = scalar_lea.vmem %s135_s12, 128  ;;  %p216_p3 = scmp.lt.s32.totalorder %s135_s12, %s135_s12 }
  0x2a   :  { %158 = vmatpush3.bf16.msra.mxu0 %v157_v4  ;;  %p212_p2 = scmp.ne.s32.totalorder %s135_s12, %s211_s13  ;;  %p217_p4 = scmp.lt.s32.totalorder %s211_s13, %s211_s13 }
  0x2c   :  { %p218_p5 = por %p217_p4, %p216_p3 }
  0x2d   :  { %154 = vmatmul.mubr.msk.f32.vlgmr.msra.gmra.mrb[0].mxu0 %vm51_vm1, %v41_v5 }
  0x2e   :  { %p219_p6 = pnand %p218_p5, %p212_p2 }
 0x100   :  { %v121_v7 = vpop.f32.mrb[0].mxu0 }
 0x101   :  { %v122_v8 = vadd.f32 %v144_v6, %v121_v7  ;;  %v155_v9 = vpop.f32.mrb[1].mxu0 }
 0x103   :  { %v125_v10 = vmax.f32 %v122_v8, 0.0 }
 0x105   :  { %127 = vst.msk [vmem:[#allocation7] sm:$0xff] %vm126_vm2, %v125_v10 }
 0x106   :  { %222 = shalt.err (!%p219_p6)
}
 0x107   :  { %s223_s2 = scalar_lea.hbm %s316_s3, 128 }
 0x108   :  { %p224_p7 = scmp.ne.s32.totalorder %s316_s3, %s223_s2  ;;  %p227_p8 = scmp.lt.u32.totalorder %s223_s2, %s316_s3 }
 0x10a   :  { %p229_p9 = pnand %p227_p8, %p224_p7 }
 0x10c   :  { %232 = shalt.err (!%p229_p9)
}
 0x10d   :  { %137 = dma.vmem_to_hbm [thread:$0]  %s135_s12, 128, %s316_s3, [#allocation4]  }
 0x10e   :  { %237 = dma.done.wait [#allocation4], 128  }
 0x10f   :  { %238 = vsyncadd [#allocation4], 4294967168 }
 0x110   :  { %141 = vsyncpa [#allocation3], 1 }
 0x111   :  { %142 = vsyncpa [#allocation6], 1 }
 0x112   :  { %143 = vsyncpa [#allocation4], 1 }

</bundles_post_ra>
